<compile_context>
chip_gen: v5e
topology: v5e:2x2
jax: 0.10.0
libtpu: 0.0.40
codegen_flags: <defaults>
</compile_context>

<pallas_src>
import jax
import jax.numpy as jnp
from jax import lax
from jax.experimental import pallas as pl
from jax.experimental.pallas import tpu as pltpu

# Small synthetic shapes consistent with the module's forward.
D = 32    # embed_dim
L = 8     # history length per node
B = 2     # number of nodes (primary small test)
N_V = 20  # number of items      (v2e rows)
N_C = 10  # number of categories (c2e rows)
N_R = 5   # number of rating levels (r2e rows)

NT_DIMS = (((1,), (1,)), ((), ()))  # matmul with rhs transposed (contract last dims)


def _round_up(x, m):
    return (x + m - 1) // m * m


def _pick_b_tile(n_nodes):
    """Nodes per grid step: fill the MXU M tile for this TPU generation."""
    try:
        kind = jax.devices()[0].device_kind.lower()
    except Exception:  # pragma: no cover - defensive, keeps CPU/interpret working
        kind = ""
    new_gen = ("v6" in kind) or ("v7" in kind) or ("7x" in kind)
    bt = 32 if new_gen else 16          # 256 rows on v6e/v7x, 128 rows on v5e
    if ("v7" in kind) or ("7x" in kind):
        # v7x has 2 TensorCores: keep >=2 grid steps whenever the batch allows.
        while bt > 8 and (n_nodes + bt - 1) // bt < 2:
            bt //= 2
    # Don't pad a tiny batch all the way up to the hardware-preferred tile.
    bt = min(bt, _round_up(max(n_nodes, 1), 8))
    return max(bt, 8)


def _build_kernel(b_tile, hist_len, d, p_n, p_vr, off_self, p_s,
                  off_wa1, off_w2, off_wa2, off_misc):
    """Kernel closure over the static layout of the fused weight slab."""
    rows = b_tile * hist_len

    def kernel(idx_ref, fused_ref, out_ref):
        hvc = idx_ref[:, 0:1]           # (rows,1) neighbor (category/item) ids
        hr = idx_ref[:, 1:2]            # (rows,1) rating ids
        nid = idx_ref[:, 2:3]           # (rows,1) self node id, repeated per row

        # Fused gather + folded W1:  h_pre = e_vc@W1a + e_r@W1b + b1
        io = lax.broadcasted_iota(jnp.int32, (rows, p_vr), 1)
        oh = jnp.logical_or(hvc == io, (hr + p_n) == io).astype(jnp.float32)
        h = jnp.dot(oh, fused_ref[0:p_vr, :], preferred_element_type=jnp.float32)
        h = jnp.maximum(h, 0.0)

        # o_history = relu(h @ W2 + b2)
        o = jnp.dot(h, fused_ref[off_w2:off_w2 + d, :],
                    preferred_element_type=jnp.float32)
        o = jnp.maximum(o + fused_ref[off_misc:off_misc + 1, :], 0.0)

        # Attention MLP; vrep @ Wa1b + ba1 comes pre-folded from self_fold.
        io_s = lax.broadcasted_iota(jnp.int32, (rows, p_s), 1)
        oh_s = (nid == io_s).astype(jnp.float32)
        self_pre = jnp.dot(oh_s, fused_ref[off_self:off_self + p_s, :],
                           preferred_element_type=jnp.float32)
        a = jnp.dot(o, fused_ref[off_wa1:off_wa1 + d, :],
                    preferred_element_type=jnp.float32)
        a = jnp.maximum(a + self_pre, 0.0)
        a = jnp.dot(a, fused_ref[off_wa2:off_wa2 + d, :],
                    preferred_element_type=jnp.float32)
        a = jnp.maximum(a + fused_ref[off_misc + 1:off_misc + 2, :], 0.0)

        # att3 score as a lane-wide row: (1, D) x (rows, D)^T -> (1, rows).
        # (att3 bias omitted: softmax is shift-invariant.)
        s_row = lax.dot_general(fused_ref[off_misc + 2:off_misc + 3, :], a,
                                NT_DIMS, preferred_element_type=jnp.float32)

        # Segmented softmax over each node's hist_len rows via an iota-built
        # group-membership grid (no reshapes / rolls).
        b_io = lax.broadcasted_iota(jnp.int32, (b_tile, rows), 0)
        r_io = lax.broadcasted_iota(jnp.int32, (b_tile, rows), 1)
        off = r_io - b_io * hist_len
        mask = jnp.logical_and(off >= 0, off < hist_len)
        sg = jnp.where(mask, s_row, -1e30)
        m = jnp.max(sg, axis=-1, keepdims=True)
        p = jnp.where(mask, jnp.exp(sg - m), 0.0)
        den = jnp.sum(p, axis=-1, keepdims=True)
        w_att = p * (1.0 / den)         # exact normalization (den is (b_tile,1))

        # att_history[b] = sum_l w[b,l] * o[b*hist_len + l]
        out_ref[...] = jnp.dot(w_att, o, preferred_element_type=jnp.float32)

    return kernel


def vc_aggregator_forward(nodes, history_vc, history_r, params, vc=True, b_tile=None):
    """Batched VC_Aggregator.forward (eval mode): grid over blocks of b_tile nodes."""
    c2e, r2e, v2e = params["c2e"], params["r2e"], params["v2e"]
    neigh_tbl, self_tbl = (c2e, v2e) if vc else (v2e, c2e)
    bn, hist_len = history_vc.shape
    d = c2e.shape[1]
    if b_tile is None:
        b_tile = _pick_b_tile(bn)

    hi = jax.lax.Precision.HIGHEST
    w1, b1, wa1, ba1 = params["w1"], params["b1"], params["wa1"], params["ba1"]

    # ---- fold embedding tables into the first-layer weights (once, outside) ----
    neigh_fold = jnp.dot(neigh_tbl, w1[0:d, :], precision=hi)            # (Nn, D)
    r_fold = jnp.dot(r2e, w1[d:2 * d, :], precision=hi) + b1             # b1 folded once
    self_fold = jnp.dot(self_tbl, wa1[d:2 * d, :], precision=hi) + ba1   # ba1 folded once

    def pad8(t):  # pad row counts to sublane multiples (zero rows never selected)
        return jnp.pad(t, ((0, _round_up(t.shape[0], 8) - t.shape[0]), (0, 0)))

    p_n = _round_up(neigh_fold.shape[0], 8)
    p_r = _round_up(r_fold.shape[0], 8)
    p_s = _round_up(self_fold.shape[0], 8)
    p_vr = p_n + p_r
    off_self = p_vr
    off_wa1 = off_self + p_s
    off_w2 = off_wa1 + d
    off_wa2 = off_w2 + d
    off_misc = off_wa2 + d              # rows: [b2, ba2, wa3^T] (then padding)

    misc = jnp.concatenate(
        [params["b2"], params["ba2"], params["wa3"].reshape(1, d)], axis=0)
    fused = jnp.concatenate(
        [pad8(neigh_fold), pad8(r_fold), pad8(self_fold),
         wa1[0:d, :], params["w2"], params["wa2"], pad8(misc)],
        axis=0).astype(jnp.float32)

    # ---- pack the three int32 index columns into a single operand --------------
    b_pad = _round_up(bn, b_tile)
    pb = b_pad - bn
    hvc = jnp.pad(history_vc.astype(jnp.int32), ((0, pb), (0, 0)))
    hr = jnp.pad(history_r.astype(jnp.int32), ((0, pb), (0, 0)))
    nid = jnp.broadcast_to(jnp.pad(nodes.astype(jnp.int32), (0, pb))[:, None],
                           (b_pad, hist_len))
    idx = jnp.stack([hvc, hr, nid, jnp.zeros_like(hvc)], axis=-1)
    idx = idx.reshape(b_pad * hist_len, 4)

    rows = b_tile * hist_len
    kernel = _build_kernel(b_tile, hist_len, d, p_n, p_vr, off_self, p_s,
                           off_wa1, off_w2, off_wa2, off_misc)

    out = pl.pallas_call(
        kernel,
        out_shape=jax.ShapeDtypeStruct((b_pad, d), jnp.float32),
        grid=(b_pad // b_tile,),
        in_specs=[
            # Per-node-block packed index rows.
            pl.BlockSpec((rows, 4), lambda i: (i, 0)),
            # Whole fused weight slab (~20 KB), constant block index -> resident.
            pl.BlockSpec(fused.shape, lambda i: (0, 0)),
        ],
        out_specs=pl.BlockSpec((b_tile, d), lambda i: (i, 0)),
        compiler_params=pltpu.CompilerParams(
            dimension_semantics=("parallel",)),   # node blocks independent (2 TCs on v7x)
    )(idx, fused)
    return out[:bn]                               # [B, D]


def ref_forward(nodes, history_vc, history_r, params, vc=True):
    """Pure-JAX reference of the PyTorch forward (dropout = identity)."""
    c2e, r2e, v2e = params["c2e"], params["r2e"], params["v2e"]
    outs = []
    for i in range(nodes.shape[0]):
        hist = history_vc[i]
        if vc:
            e_vc = c2e[hist]
            vc_rep = v2e[nodes[i]]
        else:
            e_vc = v2e[hist]
            vc_rep = c2e[nodes[i]]
        e_r = r2e[history_r[i]]
        x = jnp.concatenate([e_vc, e_r], axis=1)
        x = jax.nn.relu(x @ params["w1"] + params["b1"][0])
        o = jax.nn.relu(x @ params["w2"] + params["b2"][0])
        uv = jnp.broadcast_to(vc_rep[None, :], o.shape)
        a = jnp.concatenate([o, uv], axis=1)
        a = jax.nn.relu(a @ params["wa1"] + params["ba1"][0])
        a = jax.nn.relu(a @ params["wa2"] + params["ba2"][0])
        s = a @ params["wa3"] + params["ba3"][0]
        w = jax.nn.softmax(s, axis=0)
        outs.append((o.T @ w).T[0])
    return jnp.stack(outs)


def init_params(key):
    """Deterministic synthetic parameters (torch nn.Linear / nn.Embedding shapes).
    Linear weights stored pre-transposed as [in, out]; biases as [1, out]."""
    ks = jax.random.split(key, 13)
    u = lambda k, shape, fan_in: jax.random.uniform(
        k, shape, jnp.float32, -1.0 / jnp.sqrt(fan_in), 1.0 / jnp.sqrt(fan_in))
    return {
        "c2e": jax.random.normal(ks[0], (N_C, D), jnp.float32),
        "r2e": jax.random.normal(ks[1], (N_R, D), jnp.float32),
        "v2e": jax.random.normal(ks[2], (N_V, D), jnp.float32),
        "w1": u(ks[3], (2 * D, D), 2 * D), "b1": u(ks[4], (1, D), 2 * D),
        "w2": u(ks[5], (D, D), D),         "b2": u(ks[6], (1, D), D),
        "wa1": u(ks[7], (2 * D, D), 2 * D), "ba1": u(ks[8], (1, D), 2 * D),
        "wa2": u(ks[9], (D, D), D),         "ba2": u(ks[10], (1, D), D),
        "wa3": u(ks[11], (D, 1), D),        "ba3": u(ks[12], (1, 1), D),
    }


if __name__ == "__main__":
    key = jax.random.PRNGKey(0)
    k_params, k_data = jax.random.split(key, 2)
    params = init_params(k_params)

    # Primary small test (B=2) plus a larger batch that exercises the
    # multi-block "parallel" grid and batch padding paths.
    for nb in (B, 37):
        kn, kh, kr = jax.random.split(jax.random.fold_in(k_data, nb), 3)
        nodes = jax.random.randint(kn, (nb,), 0, N_V)
        history_vc = jax.random.randint(kh, (nb, L), 0, N_C)
        history_r = jax.random.randint(kr, (nb, L), 0, N_R)

        out = vc_aggregator_forward(nodes, history_vc, history_r, params, vc=True)
        out = jax.block_until_ready(out)
        ref = ref_forward(nodes, history_vc, history_r, params, vc=True)
        assert out.shape == (nb, D), out.shape
        assert jnp.allclose(out, ref, atol=1e-3, rtol=1e-3), \
            (nb, float(jnp.max(jnp.abs(out - ref))))

    print("KERNEL_OK")
</pallas_src>

<mosaic_0001>
module attributes {stable_mosaic.version = 11 : i64} {
  func.func @kernel(%arg0: i32, %arg1: memref<64x4xi32, #tpu.memory_space<vmem>>, %arg2: memref<152x32xf32, #tpu.memory_space<vmem>>, %arg3: memref<8x32xf32, #tpu.memory_space<vmem>>) attributes {dimension_semantics = [#tpu.dimension_semantics<parallel>], iteration_bounds = array<i64: 1>, scalar_prefetch = 0 : i64, scratch_operands = 0 : i64, tpu.core_type = #tpu.core_type<tc>, window_params = [{transform_indices = @transform_0, window_bounds = array<i64: 64, 4>}, {pipeline_mode = #tpu.pipeline_mode<synchronous>, transform_indices = @transform_1, window_bounds = array<i64: 152, 32>}, {transform_indices = @transform_2, window_bounds = array<i64: 8, 32>}]} {
    %c0 = arith.constant 0 : index
    %c0_0 = arith.constant 0 : index
    %0 = vector.load %arg1[%c0, %c0_0] : memref<64x4xi32, #tpu.memory_space<vmem>>, vector<64x1xi32>
    %c0_1 = arith.constant 0 : index
    %c1 = arith.constant 1 : index
    %1 = vector.load %arg1[%c0_1, %c1] : memref<64x4xi32, #tpu.memory_space<vmem>>, vector<64x1xi32>
    %c0_2 = arith.constant 0 : index
    %c2 = arith.constant 2 : index
    %2 = vector.load %arg1[%c0_2, %c2] : memref<64x4xi32, #tpu.memory_space<vmem>>, vector<64x1xi32>
    %3 = tpu.iota {dimensions = array<i32: 1>} : vector<64x24xi32>
    %4 = vector.broadcast %0 : vector<64x1xi32> to vector<64x24xi32>
    %5 = arith.cmpi eq, %4, %3 : vector<64x24xi32>
    %c16_i32 = arith.constant 16 : i32
    %6 = vector.broadcast %c16_i32 : i32 to vector<64x1xi32>
    %7 = arith.addi %1, %6 : vector<64x1xi32>
    %8 = vector.broadcast %7 : vector<64x1xi32> to vector<64x24xi32>
    %9 = arith.cmpi eq, %8, %3 : vector<64x24xi32>
    %10 = arith.ori %5, %9 : vector<64x24xi1>
    %11 = arith.extui %10 : vector<64x24xi1> to vector<64x24xi32>
    %12 = arith.sitofp %11 : vector<64x24xi32> to vector<64x24xf32>
    %c0_3 = arith.constant 0 : index
    %c0_4 = arith.constant 0 : index
    %13 = vector.load %arg2[%c0_3, %c0_4] : memref<152x32xf32, #tpu.memory_space<vmem>>, vector<24x32xf32>
    %cst = arith.constant dense<0.000000e+00> : vector<64x32xf32>
    %14 = tpu.matmul %12, %13, %cst {dimension_numbers = #tpu.dot_dimension_numbers<[1], [0], [0], [1], [0, 0, 1, 1], [], []>} : vector<64x24xf32>, vector<24x32xf32>, vector<64x32xf32> -> vector<64x32xf32>
    %cst_5 = arith.constant 0.000000e+00 : f32
    %15 = vector.broadcast %cst_5 : f32 to vector<64x32xf32>
    %16 = arith.maximumf %14, %15 : vector<64x32xf32>
    %c80 = arith.constant 80 : index
    %c0_6 = arith.constant 0 : index
    %17 = vector.load %arg2[%c80, %c0_6] : memref<152x32xf32, #tpu.memory_space<vmem>>, vector<32x32xf32>
    %cst_7 = arith.constant dense<0.000000e+00> : vector<64x32xf32>
    %18 = tpu.matmul %16, %17, %cst_7 {dimension_numbers = #tpu.dot_dimension_numbers<[1], [0], [0], [1], [0, 0, 1, 1], [], []>} : vector<64x32xf32>, vector<32x32xf32>, vector<64x32xf32> -> vector<64x32xf32>
    %c144 = arith.constant 144 : index
    %c0_8 = arith.constant 0 : index
    %19 = vector.load %arg2[%c144, %c0_8] : memref<152x32xf32, #tpu.memory_space<vmem>>, vector<1x32xf32>
    %20 = vector.broadcast %19 : vector<1x32xf32> to vector<64x32xf32>
    %21 = arith.addf %18, %20 : vector<64x32xf32>
    %cst_9 = arith.constant 0.000000e+00 : f32
    %22 = vector.broadcast %cst_9 : f32 to vector<64x32xf32>
    %23 = arith.maximumf %21, %22 : vector<64x32xf32>
    %24 = tpu.iota {dimensions = array<i32: 1>} : vector<64x24xi32>
    %25 = vector.broadcast %2 : vector<64x1xi32> to vector<64x24xi32>
    %26 = arith.cmpi eq, %25, %24 : vector<64x24xi32>
    %27 = arith.extui %26 : vector<64x24xi1> to vector<64x24xi32>
    %28 = arith.sitofp %27 : vector<64x24xi32> to vector<64x24xf32>
    %c24 = arith.constant 24 : index
    %c0_10 = arith.constant 0 : index
    %29 = vector.load %arg2[%c24, %c0_10] : memref<152x32xf32, #tpu.memory_space<vmem>>, vector<24x32xf32>
    %cst_11 = arith.constant dense<0.000000e+00> : vector<64x32xf32>
    %30 = tpu.matmul %28, %29, %cst_11 {dimension_numbers = #tpu.dot_dimension_numbers<[1], [0], [0], [1], [0, 0, 1, 1], [], []>} : vector<64x24xf32>, vector<24x32xf32>, vector<64x32xf32> -> vector<64x32xf32>
    %c48 = arith.constant 48 : index
    %c0_12 = arith.constant 0 : index
    %31 = vector.load %arg2[%c48, %c0_12] : memref<152x32xf32, #tpu.memory_space<vmem>>, vector<32x32xf32>
    %cst_13 = arith.constant dense<0.000000e+00> : vector<64x32xf32>
    %32 = tpu.matmul %23, %31, %cst_13 {dimension_numbers = #tpu.dot_dimension_numbers<[1], [0], [0], [1], [0, 0, 1, 1], [], []>} : vector<64x32xf32>, vector<32x32xf32>, vector<64x32xf32> -> vector<64x32xf32>
    %33 = arith.addf %32, %30 : vector<64x32xf32>
    %cst_14 = arith.constant 0.000000e+00 : f32
    %34 = vector.broadcast %cst_14 : f32 to vector<64x32xf32>
    %35 = arith.maximumf %33, %34 : vector<64x32xf32>
    %c112 = arith.constant 112 : index
    %c0_15 = arith.constant 0 : index
    %36 = vector.load %arg2[%c112, %c0_15] : memref<152x32xf32, #tpu.memory_space<vmem>>, vector<32x32xf32>
    %cst_16 = arith.constant dense<0.000000e+00> : vector<64x32xf32>
    %37 = tpu.matmul %35, %36, %cst_16 {dimension_numbers = #tpu.dot_dimension_numbers<[1], [0], [0], [1], [0, 0, 1, 1], [], []>} : vector<64x32xf32>, vector<32x32xf32>, vector<64x32xf32> -> vector<64x32xf32>
    %c145 = arith.constant 145 : index
    %c0_17 = arith.constant 0 : index
    %38 = vector.load %arg2[%c145, %c0_17] : memref<152x32xf32, #tpu.memory_space<vmem>>, vector<1x32xf32>
    %39 = vector.broadcast %38 : vector<1x32xf32> to vector<64x32xf32>
    %40 = arith.addf %37, %39 : vector<64x32xf32>
    %cst_18 = arith.constant 0.000000e+00 : f32
    %41 = vector.broadcast %cst_18 : f32 to vector<64x32xf32>
    %42 = arith.maximumf %40, %41 : vector<64x32xf32>
    %c146 = arith.constant 146 : index
    %c0_19 = arith.constant 0 : index
    %43 = vector.load %arg2[%c146, %c0_19] : memref<152x32xf32, #tpu.memory_space<vmem>>, vector<1x32xf32>
    %cst_20 = arith.constant dense<0.000000e+00> : vector<1x64xf32>
    %44 = tpu.matmul %43, %42, %cst_20 {dimension_numbers = #tpu.dot_dimension_numbers<[1], [1], [0], [0], [0, 0, 1, 0], [], []>} : vector<1x32xf32>, vector<64x32xf32>, vector<1x64xf32> -> vector<1x64xf32>
    %45 = tpu.iota {dimensions = array<i32: 0>} : vector<8x64xi32>
    %46 = tpu.iota {dimensions = array<i32: 1>} : vector<8x64xi32>
    %c8_i32 = arith.constant 8 : i32
    %47 = vector.broadcast %c8_i32 : i32 to vector<8x64xi32>
    %48 = arith.muli %45, %47 : vector<8x64xi32>
    %49 = arith.subi %46, %48 : vector<8x64xi32>
    %c0_i32 = arith.constant 0 : i32
    %50 = vector.broadcast %c0_i32 : i32 to vector<8x64xi32>
    %51 = arith.cmpi sge, %49, %50 : vector<8x64xi32>
    %c8_i32_21 = arith.constant 8 : i32
    %52 = vector.broadcast %c8_i32_21 : i32 to vector<8x64xi32>
    %53 = arith.cmpi slt, %49, %52 : vector<8x64xi32>
    %54 = arith.andi %51, %53 : vector<8x64xi1>
    %cst_22 = arith.constant -1.000000e+30 : f32
    %55 = vector.shape_cast %44 : vector<1x64xf32> to vector<1x64xf32>
    %56 = vector.broadcast %55 : vector<1x64xf32> to vector<8x64xf32>
    %57 = vector.broadcast %cst_22 : f32 to vector<8x64xf32>
    %58 = arith.select %54, %56, %57 : vector<8x64xi1>, vector<8x64xf32>
    %cst_23 = arith.constant dense<0xFF800000> : vector<8xf32>
    %59 = vector.multi_reduction <maximumf>, %58, %cst_23 [1] : vector<8x64xf32> to vector<8xf32>
    %60 = vector.shape_cast %59 : vector<8xf32> to vector<8x1xf32>
    %61 = vector.broadcast %60 : vector<8x1xf32> to vector<8x64xf32>
    %62 = arith.subf %58, %61 : vector<8x64xf32>
    %63 = math.exp %62 : vector<8x64xf32>
    %cst_24 = arith.constant 0.000000e+00 : f32
    %64 = vector.broadcast %cst_24 : f32 to vector<8x64xf32>
    %65 = arith.select %54, %63, %64 : vector<8x64xi1>, vector<8x64xf32>
    %cst_25 = arith.constant dense<0.000000e+00> : vector<8xf32>
    %66 = vector.multi_reduction <add>, %65, %cst_25 [1] : vector<8x64xf32> to vector<8xf32>
    %67 = vector.shape_cast %66 : vector<8xf32> to vector<8x1xf32>
    %cst_26 = arith.constant 1.000000e+00 : f32
    %68 = vector.broadcast %cst_26 : f32 to vector<8x1xf32>
    %69 = arith.divf %68, %67 : vector<8x1xf32>
    %70 = vector.broadcast %69 : vector<8x1xf32> to vector<8x64xf32>
    %71 = arith.mulf %65, %70 : vector<8x64xf32>
    %cst_27 = arith.constant dense<0.000000e+00> : vector<8x32xf32>
    %72 = tpu.matmul %71, %23, %cst_27 {dimension_numbers = #tpu.dot_dimension_numbers<[1], [0], [0], [1], [0, 0, 1, 1], [], []>} : vector<8x64xf32>, vector<64x32xf32>, vector<8x32xf32> -> vector<8x32xf32>
    %c0_28 = arith.constant 0 : index
    %c0_29 = arith.constant 0 : index
    %73 = vector.load %arg3[%c0_28, %c0_29] : memref<8x32xf32, #tpu.memory_space<vmem>>, vector<8x32xf32>
    tpu.vector_store %arg3[%c0_28, %c0_29], %72 {strides = array<i32>} : memref<8x32xf32, #tpu.memory_space<vmem>>, vector<8x32xf32>,
    return
  }
  func.func @transform_0(%arg0: i32) -> (i32, i32) {
    %c0_i32 = arith.constant 0 : i32
    %c0_i32_0 = arith.constant 0 : i32
    return %arg0, %c0_i32 : i32, i32
  }
  func.func @transform_1(%arg0: i32) -> (i32, i32) {
    %c0_i32 = arith.constant 0 : i32
    %c0_i32_0 = arith.constant 0 : i32
    %c0_i32_1 = arith.constant 0 : i32
    return %c0_i32, %c0_i32_0 : i32, i32
  }
  func.func @transform_2(%arg0: i32) -> (i32, i32) {
    %c0_i32 = arith.constant 0 : i32
    %c0_i32_0 = arith.constant 0 : i32
    return %arg0, %c0_i32 : i32, i32
  }
}

</mosaic_0001>

<bundles_post_ra>
// kernel: tpu_custom_call.1
= control target key start
LH: loop header
LB: loop body
LE: loop exit
PB: predicated region body
PF: predicated region fallthrough
CT: control target
= control target key end

     0   :  { %v796_v2 = vmov 0   ;;  %s1044_s0 = inlined_call_operand.vmem [shape: s32[64,4], index: 0, kind: input, shape index: {}]   ;;  %s1045_s1 = inlined_call_operand.vmem [shape: f32[152,32], index: 1, kind: input, shape index: {}]   ;;  %s1046_s2 = inlined_call_operand.hbm [shape: f32[8,32], index: 2, kind: output, shape index: {}]  }
   0x1   :  { %v819_v0 = vld [vmem:[%s1044_s0 + $0x8] sm:$0xff]  ;;  %v824_v1 = vld [vmem:[%s1044_s0] sm:$0xff]  ;;  %750 = vset.pattern.permute.xlu1 %v796_v2  ;;  %748 = vset.pattern.permute.xlu0 %v796_v2  ;;  %v829_v3 = vld [vmem:[%s1044_s0 + $0x10] sm:$0xff] }
   0x2   :  { %26 = vperm.xlu1 %750, %v819_v0   ;;  %23 = vperm.xlu0 %748, %v824_v1  }
   0x3   :  { %752 = vset.pattern.permute.xlu2 %v796_v2 }
   0x4   :  { %7 = vsyncpa [#allocation3], 0  ;;  %29 = vperm.xlu2 %752, %v829_v3   ;;  %v55_v4 = vadd.s32 16, %v819_v0  ;;  %v54_v5 = vadd.s32 16, %v824_v1  ;;  %v56_v6 = vadd.s32 16, %v829_v3  ;;  %v797_v7 = vmov 1  }
   0x5   :  { %v840_v8 = vld [vmem:[%s1044_s0 + $0x18] sm:$0xff]  ;;  %v846_v10 = vld [vmem:[%s1044_s0 + $0x20] sm:$0xff]  ;;  %v853_v11 = vld [vmem:[%s1044_s0 + $0x30] sm:$0xff]  ;;  %v20_v24 = vlaneseq  ;;  %vm121_vm2 = vcmask 195584   ;;  %v798_v29 = vmov 0.0   ;;  %v799_v38 = vmov 2  }
   0x6   :  { %v57_v9 = vadd.s32 16, %v840_v8  ;;  %v58_v12 = vadd.s32 16, %v846_v10  ;;  %v60_v13 = vadd.s32 16, %v853_v11  ;;  %v860_v14 = vld [vmem:[%s1044_s0 + $0x28] sm:$0xff]  ;;  %v868_v16 = vld [vmem:[%s1044_s0 + $0x38] sm:$0xff]  ;;  %v120_v18 = vld [vmem:[%s1045_s1 + $0x10] sm:$0xff] }
   0x7   :  { %v59_v15 = vadd.s32 16, %v860_v14  ;;  %v61_v17 = vadd.s32 16, %v868_v16  ;;  %159 = vmatpush.msra.mxu0 %v120_v18  ;;  %737 = vmatpush.msra.mxu2 %v120_v18  ;;  %v119_v19 = vld [vmem:[%s1045_s1 + $0x8] sm:$0xff]  ;;  %v118_v20 = vld [vmem:[%s1045_s1] sm:$0xff]  ;;  %v882_v26 = vand.u32 127, %v20_v24  ;;  %v196_v41 = vld [vmem:[%s1045_s1 + $0x58] sm:$0xff] }
   0x8   :  { %738 = vmatpush.msra.mxu3 %v120_v18  ;;  %v198_v36 = vld [vmem:[%s1045_s1 + $0x68] sm:$0xff]  ;;  %v197_v39 = vld [vmem:[%s1045_s1 + $0x60] sm:$0xff]  ;;  %v195_v52 = vld [vmem:[%s1045_s1 + $0x50] sm:$0xff]  ;;  %s662_s12 = sshll.u32 %s1046_s2, 4  ;;  %s663_s12 = int_to_ptr.hbm [resolvable:$true] %s662_s12 }
   0x9   :  { %160 = vmatpush.msra.mxu0 %v119_v19  ;;  %739 = vmatpush.msra.mxu2 %v119_v19  ;;  %v325_v61 = vld [vmem:[%s1045_s1 + $0x28] sm:$0xff]  ;;  %v324_v62 = vld [vmem:[%s1045_s1 + $0x20] sm:$0xff] }
   0xa   :  { %751 = vset.pattern.permute.xlu1 %v797_v7  ;;  %749 = vset.pattern.permute.xlu0 %v797_v7 }
   0xb   :  { %66 = vperm.xlu1 %751, %v55_v4   ;;  %63 = vperm.xlu0 %749, %v54_v5   ;;  %v394_v5 = vld [vmem:[%s1045_s1 + $0x48] sm:$0xff] }
   0xc   :  { %753 = vset.pattern.permute.xlu2 %v797_v7  ;;  %740 = vmatpush.msra.mxu3 %v119_v19  ;;  %v393_v19 = vld [vmem:[%s1045_s1 + $0x40] sm:$0xff] }
   0xd   :  { %69 = vperm.xlu2 %753, %v56_v6   ;;  %161 = vmatpush.msra.mxu0 %v118_v20 }
   0xe   :  { %741 = vmatpush.msra.mxu2 %v118_v20  ;;  %742 = vmatpush.msra.mxu3 %v118_v20  ;;  %v392_v20 = vld [vmem:[%s1045_s1 + $0x38] sm:$0xff] }
   0xf   :  { %238 = vmatpush.msra.mxu1 %v198_v36 }
  0x10   :  { %363 = vmatpush.msrb.mxu2 %v325_v61  ;;  %431 = vmatpush.msrb.mxu3 %v394_v5 }
  0x11   :  { %239 = vmatpush.msra.mxu1 %v197_v39 }
  0x12   :  { %364 = vmatpush.msrb.mxu2 %v324_v62  ;;  %432 = vmatpush.msrb.mxu3 %v393_v19 }
  0x13   :  { %754 = vset.pattern.permute.xlu1 %v796_v2  ;;  %755 = vset.pattern.permute.xlu0 %v796_v2 }
  0x14   :  { %32 = vperm.xlu1 %754, %v840_v8   ;;  %35 = vperm.xlu0 %755, %v846_v10  }
  0x15   :  { %72 = vperm.xlu2 %753, %v57_v9   ;;  %240 = vmatpush.msra.mxu1 %v196_v41 }
  0x16   :  { %433 = vmatpush.msrb.mxu3 %v392_v20 }
  0x17   :  { %241 = vmatpush.msra.mxu1 %v195_v52 }
  0x1c   :  { %756 = vset.pattern.permute.xlu1 %v797_v7  ;;  %758 = vset.pattern.permute.xlu0 %v797_v7 }
  0x1d   :  { %75 = vperm.xlu1 %756, %v58_v12   ;;  %81 = vperm.xlu0 %758, %v60_v13  }
  0x1e   :  { %757 = vset.pattern.permute.xlu2 %v796_v2 }
  0x1f   :  { %38 = vperm.xlu2 %757, %v860_v14  }
  0x25   :  { %78 = vperm.xlu1 %756, %v59_v15   ;;  %763 = vset.pattern.permute.xlu0 %v799_v38 }
  0x26   :  { %282 = vperm.xlu0 %763, %v829_v3  }
  0x27   :  { %41 = vperm.xlu2 %757, %v853_v11  }
  0x2d   :  { %759 = vset.pattern.permute.xlu1 %v796_v2 }
  0x2e   :  { %44 = vperm.xlu1 %759, %v868_v16   ;;  %297 = vperm.xlu0 %763, %v868_v16  }
  0x2f   :  { %760 = vset.pattern.permute.xlu2 %v797_v7 }
  0x30   :  { %84 = vperm.xlu2 %760, %v61_v17  }
  0x36   :  { %761 = vset.pattern.permute.xlu1 %v799_v38 }
  0x37   :  { %276 = vperm.xlu1 %761, %v824_v1   ;;  %v323_v1 = vld [vmem:[%s1045_s1 + $0x18] sm:$0xff] }
  0x38   :  { %762 = vset.pattern.permute.xlu2 %v799_v38  ;;  %365 = vmatpush.msrb.mxu2 %v323_v1 }
  0x39   :  { %279 = vperm.xlu2 %762, %v819_v0  }
  0x3f   :  { %285 = vperm.xlu1 %761, %v840_v8  }
  0x41   :  { %288 = vperm.xlu2 %762, %v846_v10  }
  0x47   :  { %291 = vperm.xlu1 %761, %v860_v14  }
  0x49   :  { %294 = vperm.xlu2 %762, %v853_v11  }
  0x5e   :  { %v30_v21 = vpop.permute.xlu2 %29 }
  0x5f   :  { %vm48_vm10 = vcmp.eq.s32.totalorder %v30_v21, %v882_v26 }
  0x67   :  { %v70_v25 = vpop.permute.xlu2 %69 }
  0x68   :  { %vm88_vm11 = vcmp.eq.s32.totalorder %v70_v25, %v882_v26 }
  0x69   :  { %vm96_vm12 = vmor %vm48_vm10, %vm88_vm11  ;;  %vm201_vm10 = vcmask 261120  }
  0x6a   :  { %v673_v42 = vsel %vm96_vm12, 1.0, %v798_v29 }
  0x6f   :  { %v73_v31 = vpop.permute.xlu2 %72 }
  0x70   :  { %vm89_vm6 = vcmp.eq.s32.totalorder %v73_v31, %v882_v26  ;;  %v764_v31 = vld [vmem:[%s1045_s1 + $0x90] ss:$0 sm:$0xff] }
  0x74   :  { %v24_v22 = vpop.permute.xlu0 %23  ;;  %v27_v23 = vpop.permute.xlu1 %26 }
  0x75   :  { %vm46_vm1 = vcmp.eq.s32.totalorder %v24_v22, %v882_v26  ;;  %vm47_vm4 = vcmp.eq.s32.totalorder %v27_v23, %v882_v26  ;;  %v391_v22 = vld [vmem:[%s1045_s1 + $0x30] sm:$0xff] }
  0x76   :  { %434 = vmatpush.msrb.mxu3 %v391_v22 }
  0x79   :  { %v39_v37 = vpop.permute.xlu2 %38 }
  0x7d   :  { %v64_v27 = vpop.permute.xlu0 %63  ;;  %v67_v28 = vpop.permute.xlu1 %66 }
  0x7e   :  { %vm86_vm0 = vcmp.eq.s32.totalorder %v64_v27, %v882_v26  ;;  %vm87_vm5 = vcmp.eq.s32.totalorder %v67_v28, %v882_v26 }
  0x7f   :  { %vm94_vm3 = vmor %vm46_vm1, %vm86_vm0  ;;  %vm51_vm0 = vcmp.eq.s32.totalorder %v39_v37, %v882_v26 }
  0x80   :  { %v671_v30 = vsel %vm94_vm3, 1.0, %v798_v29  ;;  %vm95_vm7 = vmor %vm47_vm4, %vm87_vm5 }
  0x81   :  { %679 = vmatmul.msk.f32.vlgmr.msra.gmra.mxu0 %vm121_vm2, %v671_v30  ;;  %v672_v33 = vsel %vm95_vm7, 1.0, %v798_v29  ;;  %v42_v44 = vpop.permute.xlu2 %41 }
  0x82   :  { %vm52_vm4 = vcmp.eq.s32.totalorder %v42_v44, %v882_v26 }
  0x86   :  { %v33_v32 = vpop.permute.xlu1 %32  ;;  %v36_v35 = vpop.permute.xlu0 %35 }
  0x87   :  { %vm49_vm8 = vcmp.eq.s32.totalorder %v33_v32, %v882_v26  ;;  %vm50_vm13 = vcmp.eq.s32.totalorder %v36_v35, %v882_v26 }
  0x88   :  { %vm97_vm9 = vmor %vm49_vm8, %vm89_vm6 }
  0x89   :  { %v674_v34 = vsel %vm97_vm9, 1.0, %v798_v29  ;;  %680 = vmatmul.msk.f32.gmra.mxu0 %vm121_vm2, %v672_v33 }
  0x8a   :  { %682 = vmatmul.msk.f32.vlgmr.msra.gmra.mxu2 %vm121_vm2, %v674_v34  ;;  %v85_v48 = vpop.permute.xlu2 %84 }
  0x8b   :  { %vm93_vm7 = vcmp.eq.s32.totalorder %v85_v48, %v882_v26 }
  0x8f   :  { %v76_v40 = vpop.permute.xlu1 %75  ;;  %v82_v46 = vpop.permute.xlu0 %81 }
  0x90   :  { %vm90_vm14 = vcmp.eq.s32.totalorder %v76_v40, %v882_v26  ;;  %vm92_vm5 = vcmp.eq.s32.totalorder %v82_v46, %v882_v26 }
  0x91   :  { %vm98_vm15 = vmor %vm50_vm13, %vm90_vm14  ;;  %681 = vmatmul.msk.f32.gmra.mxu0 %vm121_vm2, %v673_v42 }
  0x92   :  { %v675_v43 = vsel %vm98_vm15, 1.0, %v798_v29  ;;  %vm100_vm6 = vmor %vm52_vm4, %vm92_vm5 }
  0x93   :  { %683 = vmatmul.msk.f32.gmra.mxu2 %vm121_vm2, %v675_v43  ;;  %v677_v49 = vsel %vm100_vm6, 1.0, %v798_v29  ;;  %v280_v4 = vpop.permute.xlu2 %279  ;;  %vm604_vm6 = vcmask 523264  }
  0x94   :  { %vm300_vm12 = vcmp.eq.s32.totalorder %v280_v4, %v882_v26 }
  0x95   :  { %v696_v7 = vsel %vm300_vm12, 1.0, %v798_v29 }
  0x97   :  { %v79_v45 = vpop.permute.xlu1 %78 }
  0x98   :  { %vm91_vm1 = vcmp.eq.s32.totalorder %v79_v45, %v882_v26  ;;  %v283_v8 = vpop.permute.xlu0 %282 }
  0x99   :  { %vm99_vm3 = vmor %vm51_vm0, %vm91_vm1  ;;  %vm301_vm13 = vcmp.eq.s32.totalorder %v283_v8, %v882_v26 }
  0x9a   :  { %v676_v47 = vsel %vm99_vm3, 1.0, %v798_v29  ;;  %v697_v11 = vsel %vm301_vm13, 1.0, %v798_v29 }
  0x9b   :  { %684 = vmatmul.msk.f32.vlgmr.msra.gmra.mxu3 %vm121_vm2, %v676_v47  ;;  %v289_v17 = vpop.permute.xlu2 %288 }
  0x9c   :  { %vm303_vm15 = vcmp.eq.s32.totalorder %v289_v17, %v882_v26 }
  0x9d   :  { %v699_v18 = vsel %vm303_vm15, 1.0, %v798_v29 }
  0xa0   :  { %v45_v50 = vpop.permute.xlu1 %44  ;;  %v298_v28 = vpop.permute.xlu0 %297 }
  0xa1   :  { %vm53_vm8 = vcmp.eq.s32.totalorder %v45_v50, %v882_v26  ;;  %vm306_vm3 = vcmp.eq.s32.totalorder %v298_v28, %v882_v26 }
  0xa2   :  { %vm101_vm9 = vmor %vm53_vm8, %vm93_vm7  ;;  %v702_v30 = vsel %vm306_vm3, 1.0, %v798_v29 }
  0xa3   :  { %685 = vmatmul.msk.f32.gmra.mxu3 %vm121_vm2, %v677_v49  ;;  %v678_v51 = vsel %vm101_vm9, 1.0, %v798_v29  ;;  %v295_v25 = vpop.permute.xlu2 %294  ;;  %v471_v49 = vld [vmem:[%s1045_s1 + $0x88] sm:$0xff] }
  0xa4   :  { %vm305_vm1 = vcmp.eq.s32.totalorder %v295_v25, %v882_v26  ;;  %510 = vmatpush.msrb.mxu0 %v471_v49 }
  0xa5   :  { %v701_v27 = vsel %vm305_vm1, 1.0, %v798_v29 }
  0xa9   :  { %v277_v63 = vpop.permute.xlu1 %276 }
  0xaa   :  { %vm299_vm11 = vcmp.eq.s32.totalorder %v277_v63, %v882_v26 }
  0xab   :  { %686 = vmatmul.msk.f32.gmra.mxu3 %vm121_vm2, %v678_v51  ;;  %v695_v2 = vsel %vm299_vm11, 1.0, %v798_v29 }
  0xac   :  { %703 = vmatmul.msk.f32.vlgmr.msrb.gmra.mxu2 %vm121_vm2, %v695_v2 }
  0xb1   :  { %v286_v12 = vpop.permute.xlu1 %285 }
  0xb2   :  { %vm302_vm14 = vcmp.eq.s32.totalorder %v286_v12, %v882_v26 }
  0xb3   :  { %v698_v15 = vsel %vm302_vm14, 1.0, %v798_v29 }
  0xb4   :  { %704 = vmatmul.msk.f32.gmra.mxu2 %vm121_vm2, %v696_v7 }
  0xb9   :  { %v292_v21 = vpop.permute.xlu1 %291 }
  0xba   :  { %vm304_vm0 = vcmp.eq.s32.totalorder %v292_v21, %v882_v26 }
  0xbb   :  { %v700_v23 = vsel %vm304_vm0, 1.0, %v798_v29 }
  0xbc   :  { %705 = vmatmul.msk.f32.gmra.mxu2 %vm121_vm2, %v697_v11 }
  0xc4   :  { %706 = vmatmul.msk.f32.gmra.mxu2 %vm121_vm2, %v698_v15 }
  0xcc   :  { %707 = vmatmul.msk.f32.gmra.mxu2 %vm121_vm2, %v699_v18 }
  0xd4   :  { %708 = vmatmul.msk.f32.gmra.mxu2 %vm121_vm2, %v700_v23 }
  0xdc   :  { %709 = vmatmul.msk.f32.gmra.mxu2 %vm121_vm2, %v701_v27 }
  0xe4   :  { %710 = vmatmul.msk.f32.gmra.mxu2 %vm121_vm2, %v702_v30 }
  0xfe   :  { %v163_v53 = vpop.f32.mrf.mxu0 }
  0xff   :  { %v187_v54 = vmax.f32 %v163_v53, 0.0 }
 0x101   :  { %687 = vmatmul.msk.f32.vlgmr.msra.gmra.mxu1 %vm201_vm10, %v187_v54 }
 0x106   :  { %v166_v55 = vpop.f32.mrf.mxu0 }
 0x107   :  { %v188_v56 = vmax.f32 %v166_v55, 0.0 }
 0x109   :  { %688 = vmatmul.msk.f32.gmra.mxu1 %vm201_vm10, %v188_v56  ;;  %v470_v56 = vld [vmem:[%s1045_s1 + $0x80] sm:$0xff] }
 0x10a   :  { %511 = vmatpush.msrb.mxu0 %v470_v56 }
 0x10d   :  { %v172_v59 = vpop.f32.mrf.mxu2 }
 0x10e   :  { %v169_v57 = vpop.f32.mrf.mxu0  ;;  %v190_v60 = vmax.f32 %v172_v59, 0.0 }
 0x10f   :  { %v189_v58 = vmax.f32 %v169_v57, 0.0  ;;  %v469_v57 = vld [vmem:[%s1045_s1 + $0x78] sm:$0xff] }
 0x110   :  { %512 = vmatpush.msrb.mxu0 %v469_v57 }
 0x111   :  { %689 = vmatmul.msk.f32.gmra.mxu1 %vm201_vm10, %v189_v58  ;;  %v468_v58 = vld [vmem:[%s1045_s1 + $0x70] sm:$0xff] }
 0x112   :  { %513 = vmatpush.msrb.mxu0 %v468_v58 }
 0x116   :  { %v175_v0 = vpop.f32.mrf.mxu2 }
 0x117   :  { %v191_v3 = vmax.f32 %v175_v0, 0.0 }
 0x119   :  { %690 = vmatmul.msk.f32.gmra.mxu1 %vm201_vm10, %v190_v60 }
 0x11e   :  { %v178_v6 = vpop.f32.mrf.mxu3 }
 0x11f   :  { %v192_v9 = vmax.f32 %v178_v6, 0.0 }
 0x121   :  { %691 = vmatmul.msk.f32.gmra.mxu1 %vm201_vm10, %v191_v3 }
 0x126   :  { %v181_v10 = vpop.f32.mrf.mxu3 }
 0x127   :  { %v193_v13 = vmax.f32 %v181_v10, 0.0 }
 0x129   :  { %692 = vmatmul.msk.f32.gmra.mxu1 %vm201_vm10, %v192_v9 }
 0x12e   :  { %v184_v14 = vpop.f32.mrf.mxu3 }
 0x12f   :  { %v194_v16 = vmax.f32 %v184_v14, 0.0  ;;  %v367_v59 = vpop.f32.mrf.mxu2 }
 0x131   :  { %693 = vmatmul.msk.f32.gmra.mxu1 %vm201_vm10, %v193_v13 }
 0x137   :  { %v370_v60 = vpop.f32.mrf.mxu2 }
 0x139   :  { %694 = vmatmul.msk.f32.gmra.mxu1 %vm201_vm10, %v194_v16 }
 0x13f   :  { %v373_v0 = vpop.f32.mrf.mxu2 }
 0x147   :  { %v376_v4 = vpop.f32.mrf.mxu2 }
 0x14f   :  { %v379_v10 = vpop.f32.mrf.mxu2 }
 0x157   :  { %v382_v15 = vpop.f32.mrf.mxu2 }
 0x15f   :  { %v385_v19 = vpop.f32.mrf.mxu2 }
 0x167   :  { %v388_v23 = vpop.f32.mrf.mxu2 }
 0x17e   :  { %v243_v32 = vpop.f32.mrf.mxu1 }
 0x17f   :  { %v244_v33 = vadd.f32 %v764_v31, %v243_v32 }
 0x181   :  { %v267_v34 = vmax.f32 %v244_v33, 0.0 }
 0x183   :  { %711 = vmatmul.msk.f32.vlgmr.msrb.gmra.mxu3 %vm201_vm10, %v267_v34 }
 0x186   :  { %v246_v35 = vpop.f32.mrf.mxu1 }
 0x187   :  { %v247_v36 = vadd.f32 %v764_v31, %v246_v35 }
 0x189   :  { %v268_v37 = vmax.f32 %v247_v36, 0.0 }
 0x18b   :  { %712 = vmatmul.msk.f32.gmra.mxu3 %vm201_vm10, %v268_v37 }
 0x18e   :  { %v249_v38 = vpop.f32.mrf.mxu1 }
 0x18f   :  { %v250_v39 = vadd.f32 %v764_v31, %v249_v38 }
 0x191   :  { %v269_v40 = vmax.f32 %v250_v39, 0.0 }
 0x193   :  { %713 = vmatmul.msk.f32.gmra.mxu3 %vm201_vm10, %v269_v40 }
 0x196   :  { %v252_v29 = vpop.f32.mrf.mxu1 }
 0x197   :  { %v253_v41 = vadd.f32 %v764_v31, %v252_v29 }
 0x199   :  { %v270_v42 = vmax.f32 %v253_v41, 0.0 }
 0x19b   :  { %714 = vmatmul.msk.f32.gmra.mxu3 %vm201_vm10, %v270_v42 }
 0x19e   :  { %v255_v43 = vpop.f32.mrf.mxu1 }
 0x19f   :  { %v256_v44 = vadd.f32 %v764_v31, %v255_v43 }
 0x1a1   :  { %v271_v45 = vmax.f32 %v256_v44, 0.0 }
 0x1a3   :  { %715 = vmatmul.msk.f32.gmra.mxu3 %vm201_vm10, %v271_v45 }
 0x1a6   :  { %v258_v46 = vpop.f32.mrf.mxu1 }
 0x1a7   :  { %v259_v47 = vadd.f32 %v764_v31, %v258_v46 }
 0x1a9   :  { %v272_v48 = vmax.f32 %v259_v47, 0.0 }
 0x1ab   :  { %716 = vmatmul.msk.f32.gmra.mxu3 %vm201_vm10, %v272_v48 }
 0x1ae   :  { %v261_v50 = vpop.f32.mrf.mxu1 }
 0x1af   :  { %v262_v51 = vadd.f32 %v764_v31, %v261_v50 }
 0x1b1   :  { %v273_v52 = vmax.f32 %v262_v51, 0.0 }
 0x1b3   :  { %717 = vmatmul.msk.f32.gmra.mxu3 %vm201_vm10, %v273_v52 }
 0x1b6   :  { %v264_v53 = vpop.f32.mrf.mxu1 }
 0x1b7   :  { %v265_v54 = vadd.f32 %v764_v31, %v264_v53 }
 0x1b9   :  { %v274_v55 = vmax.f32 %v265_v54, 0.0  ;;  %v547_v54 = vld [vmem:[%s1045_s1 + $0x92] sm:$0x1] }
 0x1bb   :  { %718 = vmatmul.msk.f32.gmra.mxu3 %vm201_vm10, %v274_v55  ;;  %642 = vmatpush.msrb.mxu1 %v274_v55  ;;  %v596_v55 = vshrl.u32 %v20_v24, 7 }
 0x1bd   :  { %643 = vmatpush.msrb.mxu1 %v273_v52  ;;  %v597_v56 = vmul.u32 8, %v596_v55 }
 0x1bf   :  { %644 = vmatpush.msrb.mxu1 %v272_v48  ;;  %v598_v57 = vsub.s32 %v882_v26, %v597_v56 }
 0x1c1   :  { %645 = vmatpush.msrb.mxu1 %v271_v45  ;;  %vm599_vm2 = vcmp.ge.s32.totalorder %v598_v57, 0  ;;  %vm600_vm4 = vcmp.lt.s32.totalorder %v598_v57, 8 }
 0x1c2   :  { %vm601_vm5 = vmand %vm599_vm2, %vm600_vm4 }
 0x1c3   :  { %646 = vmatpush.msrb.mxu1 %v270_v42 }
 0x1c5   :  { %647 = vmatpush.msrb.mxu1 %v269_v40 }
 0x1c7   :  { %648 = vmatpush.msrb.mxu1 %v268_v37  ;;  %v765_v37 = vld [vmem:[%s1045_s1 + $0x91] ss:$0 sm:$0xff]  ;;  %s800_s1 = smov [#allocation2]  }
 0x1c8   :  { %s660_s9 = sshll.u32 %s800_s1, 4  ;;  %s661_s9 = int_to_ptr.vmem [resolvable:$true] %s660_s9 }
 0x1c9   :  { %649 = vmatpush.msrb.mxu1 %v267_v34 }
 0x206   :  { %v436_v61 = vpop.f32.mrf.mxu3 }
 0x207   :  { %v437_v62 = vadd.f32 %v436_v61, %v367_v59 }
 0x209   :  { %v460_v63 = vmax.f32 %v437_v62, 0.0 }
 0x20b   :  { %719 = vmatmul.msk.f32.vlgmr.msrb.gmra.mxu0 %vm201_vm10, %v460_v63 }
 0x20e   :  { %v439_v1 = vpop.f32.mrf.mxu3 }
 0x20f   :  { %v440_v2 = vadd.f32 %v439_v1, %v370_v60 }
 0x211   :  { %v461_v3 = vmax.f32 %v440_v2, 0.0 }
 0x213   :  { %720 = vmatmul.msk.f32.gmra.mxu0 %vm201_vm10, %v461_v3 }
 0x216   :  { %v442_v5 = vpop.f32.mrf.mxu3 }
 0x217   :  { %v443_v6 = vadd.f32 %v442_v5, %v373_v0 }
 0x219   :  { %v462_v7 = vmax.f32 %v443_v6, 0.0 }
 0x21b   :  { %721 = vmatmul.msk.f32.gmra.mxu0 %vm201_vm10, %v462_v7 }
 0x21e   :  { %v445_v8 = vpop.f32.mrf.mxu3 }
 0x21f   :  { %v446_v9 = vadd.f32 %v445_v8, %v376_v4 }
 0x221   :  { %v463_v11 = vmax.f32 %v446_v9, 0.0 }
 0x223   :  { %722 = vmatmul.msk.f32.gmra.mxu0 %vm201_vm10, %v463_v11 }
 0x226   :  { %v448_v12 = vpop.f32.mrf.mxu3 }
 0x227   :  { %v449_v13 = vadd.f32 %v448_v12, %v379_v10 }
 0x229   :  { %v464_v14 = vmax.f32 %v449_v13, 0.0 }
 0x22b   :  { %723 = vmatmul.msk.f32.gmra.mxu0 %vm201_vm10, %v464_v14 }
 0x22e   :  { %v451_v16 = vpop.f32.mrf.mxu3 }
 0x22f   :  { %v452_v17 = vadd.f32 %v451_v16, %v382_v15 }
 0x231   :  { %v465_v18 = vmax.f32 %v452_v17, 0.0 }
 0x233   :  { %724 = vmatmul.msk.f32.gmra.mxu0 %vm201_vm10, %v465_v18 }
 0x236   :  { %v454_v20 = vpop.f32.mrf.mxu3 }
 0x237   :  { %v455_v21 = vadd.f32 %v454_v20, %v385_v19 }
 0x239   :  { %v466_v22 = vmax.f32 %v455_v21, 0.0 }
 0x23b   :  { %725 = vmatmul.msk.f32.gmra.mxu0 %vm201_vm10, %v466_v22 }
 0x23e   :  { %v457_v25 = vpop.f32.mrf.mxu3 }
 0x23f   :  { %v458_v27 = vadd.f32 %v457_v25, %v388_v23 }
 0x241   :  { %v467_v28 = vmax.f32 %v458_v27, 0.0 }
 0x243   :  { %726 = vmatmul.msk.f32.gmra.mxu0 %vm201_vm10, %v467_v28 }
 0x288   :  { %v515_v30 = vpop.f32.mrf.mxu0 }
 0x289   :  { %v516_v51 = vadd.f32 %v765_v37, %v515_v30 }
 0x28b   :  { %v539_v53 = vmax.f32 %v516_v51, 0.0 }
 0x290   :  { %v518_v31 = vpop.f32.mrf.mxu0 }
 0x291   :  { %v519_v49 = vadd.f32 %v765_v37, %v518_v31 }
 0x293   :  { %v540_v52 = vmax.f32 %v519_v49, 0.0 }
 0x298   :  { %v521_v32 = vpop.f32.mrf.mxu0 }
 0x299   :  { %v522_v47 = vadd.f32 %v765_v37, %v521_v32 }
 0x29b   :  { %v541_v50 = vmax.f32 %v522_v47, 0.0 }
 0x2a0   :  { %v524_v33 = vpop.f32.mrf.mxu0 }
 0x2a1   :  { %v525_v45 = vadd.f32 %v765_v37, %v524_v33 }
 0x2a3   :  { %v542_v48 = vmax.f32 %v525_v45, 0.0 }
 0x2a8   :  { %v527_v34 = vpop.f32.mrf.mxu0 }
 0x2a9   :  { %v528_v43 = vadd.f32 %v765_v37, %v527_v34 }
 0x2ab   :  { %v543_v46 = vmax.f32 %v528_v43, 0.0 }
 0x2b0   :  { %v530_v35 = vpop.f32.mrf.mxu0 }
 0x2b1   :  { %v531_v41 = vadd.f32 %v765_v37, %v530_v35 }
 0x2b3   :  { %v544_v44 = vmax.f32 %v531_v41, 0.0 }
 0x2b8   :  { %v533_v36 = vpop.f32.mrf.mxu0 }
 0x2b9   :  { %v534_v40 = vadd.f32 %v765_v37, %v533_v36 }
 0x2bb   :  { %v545_v42 = vmax.f32 %v534_v40, 0.0 }
 0x2c0   :  { %v536_v38 = vpop.f32.mrf.mxu0 }
 0x2c1   :  { %v537_v39 = vadd.f32 %v765_v37, %v536_v38 }
 0x2c3   :  { %v546_v29 = vmax.f32 %v537_v39, 0.0 }
 0x2c5   :  { %727 = vmatpush.xpose.msk.msra.mxu2 %vm201_vm10, %v546_v29 }
 0x2c9   :  { %728 = vmatpush.xpose.msk.msra.mxu2 %vm201_vm10, %v545_v42 }
 0x2cd   :  { %729 = vmatpush.xpose.msk.msra.mxu2 %vm201_vm10, %v544_v44 }
 0x2d1   :  { %730 = vmatpush.xpose.msk.msra.mxu2 %vm201_vm10, %v543_v46 }
 0x2d5   :  { %731 = vmatpush.xpose.msk.msra.mxu2 %vm201_vm10, %v542_v48 }
 0x2d9   :  { %732 = vmatpush.xpose.msk.msra.mxu2 %vm201_vm10, %v541_v50 }
 0x2dd   :  { %733 = vmatpush.xpose.msk.msra.mxu2 %vm201_vm10, %v540_v52 }
 0x2e1   :  { %734 = vmatpush.xpose.msk.msra.mxu2 %vm201_vm10, %v539_v53 }
 0x2e4   :  { %735 = vmatmul.msk.f32.vlgmr.msra.gmra.mxu2 %vm201_vm10, %v547_v54 }
 0x367   :  { %v592_v58 = vpop.f32.mrf.mxu2 }
 0x368   :  { %v602_v59 = vperm.slane %v592_v58, 0 }
 0x36a   :  { %v603_v60 = vsel %vm601_vm5, %v602_v59, -1e+30 }
 0x36b   :  { %v605_v61 = vsel %vm604_vm6, %v603_v60, -inf }
 0x36c   :  { %606 = vmax.xlane.f32.xlu1 %v605_v61 }
 0x3df   :  { %v607_v62 = vpop.xlane.xlu1 %606 }
 0x3e0   :  { %v608_v63 = vsub.f32 %v603_v60, %v607_v62 }
 0x3e2   :  { %v609_v0 = vmul.f32 1.442695, %v608_v63 }
 0x3e4   :  { %766 = vpow2.f32 %v609_v0 }
 0x3ea   :  { %v767_v1 = vpop.eup %766 }
 0x3eb   :  { %v611_v2 = vsel %vm601_vm5, %v767_v1, 0.0 }
 0x3ec   :  { %v612_v24 = vsel %vm604_vm6, %v611_v2, 0.0 }
 0x3ed   :  { %613 = vadd.xlane.f32.xlu2 %v612_v24 }
 0x460   :  { %v614_v26 = vpop.xlane.xlu2 %613 }
 0x461   :  { %768 = vrcp.f32 %v614_v26  ;;  %v626_v6 = vand.u32 2147483648, %v614_v26  ;;  %v624_v8 = vand.u32 2147483647, %v614_v26  ;;  %vm620_vm8 = vweird.f32 %v614_v26 }
 0x463   :  { %v627_v10 = vor.u32 1.1754944e-38, %v626_v6  ;;  %vm625_vm11 = vcmp.eq.f32.partialorder %v624_v8, 8.507059e+37 }
 0x467   :  { %v769_v3 = vpop.eup %768 }
 0x468   :  { %v616_v4 = vmul.f32 %v769_v3, %v614_v26  ;;  %vm621_vm7 = vweird.f32 %v769_v3 }
 0x469   :  { %vm622_vm9 = vmor %vm620_vm8, %vm621_vm7 }
 0x46a   :  { %v617_v5 = vsub.f32 1.0, %v616_v4 }
 0x46c   :  { %v618_v7 = vmul.f32 %v769_v3, %v617_v5 }
 0x46e   :  { %v619_v9 = vadd.f32 %v769_v3, %v618_v7 }
 0x470   :  { %v623_v11 = vsel %vm622_vm9, %v769_v3, %v619_v9 }
 0x471   :  { %v628_v12 = vsel %vm625_vm11, %v627_v10, %v623_v11 }
 0x472   :  { %v630_v13 = vmul.f32 %v628_v12, %v611_v2 }
 0x474   :  { %736 = vmatmul.msk.f32.vlgmr.msrb.gmra.mxu1 %vm604_vm6, %v630_v13 }
 0x4f1   :  { %v651_v14 = vpop.f32.mrf.mxu1 }
 0x4f2   :  { %654 = vst.msk [vmem:[#allocation2] sm:$0xff] %vm201_vm10, %v651_v14 }
 0x4f3   :  { %665 = dma.vmem_to_hbm [thread:$0]  %s661_s9, 128, %s663_s12, [#allocation3]  }
 0x4f4   :  { %794 = dma.done.wait [#allocation3], 128  }
 0x4f5   :  { %795 = vsyncadd [#allocation3], 4294967168 }
 0x4f6   :  { %670 = vsyncpa [#allocation3], 1 }

</bundles_post_ra>
